<compile_context>
chip_gen: v5e
topology: v5e:2x2
jax: 0.10.0
libtpu: 0.0.40
codegen_flags: <defaults>
</compile_context>

<pallas_src>
import jax
import jax.numpy as jnp
from jax.experimental import pallas as pl
from jax.experimental.pallas import tpu as pltpu

LATENT_DIM = 3
NUM_CLASSES = 10
IMG_PIX = 28 * 28                   # 784
IMG_PAD = 896                       # 7 * 128, lane-dense padded image width
EMB_DIM = 16
HID_DIM = 128
AUX_DIM = NUM_CLASSES + LATENT_DIM  # 13: [one_hot(10) | eps(3)]
HEAD_DIM = 2 * LATENT_DIM           # 6:  [mu(3) | logvar(3)]

TILE_B = 512                        # batch tile (re-derived to <=512 for small B)


def _round_up(x, m):
    return (x + m - 1) // m * m


def _cvae_kernel(
    # per-row inputs
    img_ref, aux_ref,
    # encoder params (VMEM-resident across the grid)
    ew_emb_ref, eb_emb_ref, ew_h_img_ref, ew_h_emb_ref, eb_h_ref,
    w_head_ref, b_head_ref,
    # decoder params (VMEM-resident across the grid)
    dw_emb_ref, db_emb_ref, dw_h_z_ref, dw_h_emb_ref, db_h_ref,
    dw_out_ref, db_out_ref,
    # outputs
    recon_ref, head_ref,
):
    img = img_ref[...]                                    # (TB, 896) bf16
    aux = aux_ref[...]                                    # (TB, 13)  f32
    onehot = aux[:, :NUM_CLASSES]                         # (TB, 10)
    eps = aux[:, NUM_CLASSES:NUM_CLASSES + LATENT_DIM]    # (TB, 3)

    # ----- Encoder -----
    e_emb = jnp.maximum(
        jnp.dot(onehot, ew_emb_ref[...], preferred_element_type=jnp.float32)
        + eb_emb_ref[...], 0.0)                           # (TB, 16)

    # fc_hidden(concat([img, emb])) == img @ W_img + emb @ W_emb + b
    e_h = (
        jnp.dot(img, ew_h_img_ref[...], preferred_element_type=jnp.float32)
        + jnp.dot(e_emb, ew_h_emb_ref[...], preferred_element_type=jnp.float32)
        + eb_h_ref[...])
    e_h = jnp.maximum(e_h, 0.0)                           # (TB, 128) f32

    # fused mu/logvar head: single (TB,128) @ (128,6) matmul
    head = (jnp.dot(e_h, w_head_ref[...], preferred_element_type=jnp.float32)
            + b_head_ref[...])                            # (TB, 6)
    mu = head[:, :LATENT_DIM]
    logvar = head[:, LATENT_DIM:]

    # ----- Reparameterize -----
    z = mu + jnp.exp(0.5 * logvar) * eps                  # (TB, 3)

    # ----- Decoder -----
    d_emb = jnp.maximum(
        jnp.dot(onehot, dw_emb_ref[...], preferred_element_type=jnp.float32)
        + db_emb_ref[...], 0.0)                           # (TB, 16)

    d_h = (
        jnp.dot(z, dw_h_z_ref[...], preferred_element_type=jnp.float32)
        + jnp.dot(d_emb, dw_h_emb_ref[...], preferred_element_type=jnp.float32)
        + db_h_ref[...])
    d_h = jnp.maximum(d_h, 0.0)                           # (TB, 128) f32

    logits = (
        jnp.dot(d_h.astype(jnp.bfloat16), dw_out_ref[...],
                preferred_element_type=jnp.float32)
        + db_out_ref[...])                                # (TB, 896)

    recon_ref[...] = jax.nn.sigmoid(logits)               # f32 sigmoid (EUP)
    head_ref[...] = head


def init_params(key):
    """Deterministic parameter init (shapes match the PyTorch module).

    Weights are stored already transposed to (in, out) so kernels do x @ W
    directly (PyTorch Linear computes x @ W.T + b).
    """
    ks = jax.random.split(key, 14)
    u = lambda k, shape, fan_in: jax.random.uniform(
        k, shape, jnp.float32, -1.0 / jnp.sqrt(fan_in), 1.0 / jnp.sqrt(fan_in)
    )
    params = {
        # encoder
        "ew_emb": u(ks[0], (NUM_CLASSES, EMB_DIM), NUM_CLASSES),
        "eb_emb": u(ks[1], (1, EMB_DIM), NUM_CLASSES),
        # fc_hidden weight (800,128) split: image part (784,128) + emb part (16,128)
        "ew_h_img": u(ks[2], (IMG_PIX, HID_DIM), IMG_PIX + EMB_DIM),
        "ew_h_emb": u(ks[3], (EMB_DIM, HID_DIM), IMG_PIX + EMB_DIM),
        "eb_h": u(ks[4], (1, HID_DIM), IMG_PIX + EMB_DIM),
        "ew_mu": u(ks[5], (HID_DIM, LATENT_DIM), HID_DIM),
        "eb_mu": u(ks[6], (1, LATENT_DIM), HID_DIM),
        "ew_lv": u(ks[7], (HID_DIM, LATENT_DIM), HID_DIM),
        "eb_lv": u(ks[8], (1, LATENT_DIM), HID_DIM),
        # decoder
        "dw_emb": u(ks[9], (NUM_CLASSES, EMB_DIM), NUM_CLASSES),
        "db_emb": u(ks[10], (1, EMB_DIM), NUM_CLASSES),
        # fc_hidden weight (19,128) split: z part (3,128) + emb part (16,128)
        "dw_h_z": u(ks[11], (LATENT_DIM, HID_DIM), LATENT_DIM + EMB_DIM),
        "dw_h_emb": u(ks[12], (EMB_DIM, HID_DIM), LATENT_DIM + EMB_DIM),
        "db_h": u(ks[13], (1, HID_DIM), LATENT_DIM + EMB_DIM),
        "dw_out": u(jax.random.fold_in(key, 100), (HID_DIM, IMG_PIX), HID_DIM),
        "db_out": u(jax.random.fold_in(key, 101), (1, IMG_PIX), HID_DIM),
    }
    return params


def prepare_kernel_params(params):
    """One-time repack: pad to lane-dense 896, cast big matrices to bf16, fuse heads."""
    kp = {}
    kp["ew_emb"] = params["ew_emb"]
    kp["eb_emb"] = params["eb_emb"]
    # 784 -> 896 zero-padded rows (zeros contribute nothing), bf16 for the MXU.
    kp["ew_h_img"] = jnp.pad(
        params["ew_h_img"], ((0, IMG_PAD - IMG_PIX), (0, 0))).astype(jnp.bfloat16)
    kp["ew_h_emb"] = params["ew_h_emb"]
    kp["eb_h"] = params["eb_h"]
    # fused mu/logvar head: (128, 6) weight, (1, 6) bias
    kp["w_head"] = jnp.concatenate([params["ew_mu"], params["ew_lv"]], axis=1)
    kp["b_head"] = jnp.concatenate([params["eb_mu"], params["eb_lv"]], axis=1)
    kp["dw_emb"] = params["dw_emb"]
    kp["db_emb"] = params["db_emb"]
    kp["dw_h_z"] = params["dw_h_z"]
    kp["dw_h_emb"] = params["dw_h_emb"]
    kp["db_h"] = params["db_h"]
    # 784 -> 896 zero-padded output columns, bf16 weight; bias stays f32.
    kp["dw_out"] = jnp.pad(
        params["dw_out"], ((0, 0), (0, IMG_PAD - IMG_PIX))).astype(jnp.bfloat16)
    kp["db_out"] = jnp.pad(params["db_out"], ((0, 0), (0, IMG_PAD - IMG_PIX)))
    return kp


_PARAM_ORDER = [
    "ew_emb", "eb_emb", "ew_h_img", "ew_h_emb", "eb_h", "w_head", "b_head",
    "dw_emb", "db_emb", "dw_h_z", "dw_h_emb", "db_h", "dw_out", "db_out",
]


@jax.jit
def cvae_forward(image, label, eps, kparams):
    """image: (B,1,28,28) f32, label: (B,) int32, eps: (B, LATENT_DIM) f32.
    kparams: output of prepare_kernel_params(init_params(...))."""
    b = image.shape[0]
    tb = min(TILE_B, _round_up(b, 8))
    b_pad = _round_up(b, tb)
    grid = (b_pad // tb,)

    # Flatten image, zero-pad batch + lane dim (784 -> 896), bf16 for the MXU.
    img = image.reshape(b, IMG_PIX).astype(jnp.float32)
    img = jnp.pad(img, ((0, b_pad - b), (0, IMG_PAD - IMG_PIX))).astype(jnp.bfloat16)

    # aux = [one_hot(label) | eps] — one small f32 DMA per tile, no int32 buffer.
    onehot = jax.nn.one_hot(label, NUM_CLASSES, dtype=jnp.float32)
    aux = jnp.concatenate([onehot, eps.astype(jnp.float32)], axis=1)   # (B, 13)
    aux = jnp.pad(aux, ((0, b_pad - b), (0, 0)))

    row_spec = lambda width: pl.BlockSpec((tb, width), lambda i: (i, 0))
    full_spec = lambda arr: pl.BlockSpec(arr.shape, lambda i: (0,) * arr.ndim)

    weights = [kparams[k] for k in _PARAM_ORDER]

    recon_pad, head = pl.pallas_call(
        _cvae_kernel,
        grid=grid,
        in_specs=[row_spec(IMG_PAD), row_spec(AUX_DIM)]
                 + [full_spec(w) for w in weights],
        out_specs=(row_spec(IMG_PAD), row_spec(HEAD_DIM)),
        out_shape=(
            jax.ShapeDtypeStruct((b_pad, IMG_PAD), jnp.float32),
            jax.ShapeDtypeStruct((b_pad, HEAD_DIM), jnp.float32),
        ),
        compiler_params=pltpu.CompilerParams(
            dimension_semantics=("parallel",),       # megacore split on v7x
            vmem_limit_bytes=32 * 1024 * 1024,       # ~7.5 MiB used at TILE_B=512
        ),
    )(img, aux, *weights)

    reconstructed = recon_pad[:b, :IMG_PIX].reshape(b, 1, 28, 28)
    mu = head[:b, :LATENT_DIM]
    logvar = head[:b, LATENT_DIM:]
    return reconstructed, mu, logvar


def cvae_forward_ref(image, label, eps, params):
    """Pure-JAX reference mirroring the PyTorch forward pass, with the same bf16
    treatment of the two large matmuls as the kernel."""
    b = image.shape[0]
    img = image.reshape(b, IMG_PIX)
    onehot = jax.nn.one_hot(label, NUM_CLASSES, dtype=jnp.float32)
    # encoder
    e_emb = jax.nn.relu(onehot @ params["ew_emb"] + params["eb_emb"])
    e_h = jax.nn.relu(
        jnp.dot(img.astype(jnp.bfloat16), params["ew_h_img"].astype(jnp.bfloat16),
                preferred_element_type=jnp.float32)
        + e_emb @ params["ew_h_emb"] + params["eb_h"])
    mu = e_h @ params["ew_mu"] + params["eb_mu"]
    logvar = e_h @ params["ew_lv"] + params["eb_lv"]
    z = mu + jnp.exp(0.5 * logvar) * eps
    # decoder
    d_emb = jax.nn.relu(onehot @ params["dw_emb"] + params["db_emb"])
    d_h = jax.nn.relu(
        z @ params["dw_h_z"] + d_emb @ params["dw_h_emb"] + params["db_h"])
    logits = jnp.dot(d_h.astype(jnp.bfloat16), params["dw_out"].astype(jnp.bfloat16),
                     preferred_element_type=jnp.float32) + params["db_out"]
    recon = jax.nn.sigmoid(logits)
    return recon.reshape(b, 1, 28, 28), mu, logvar


if __name__ == "__main__":
    key = jax.random.PRNGKey(0)
    k_img, k_label, k_eps, k_params = jax.random.split(key, 4)

    B = 4
    image = jax.random.uniform(k_img, (B, 1, 28, 28), jnp.float32)
    label = jax.random.randint(k_label, (B,), 0, NUM_CLASSES, jnp.int32)
    # TODO(synk): torch.randn_like noise is sampled outside the kernel (host RNG)
    # so the kernel stays deterministic; an in-kernel pltpu.prng_* variant is possible.
    eps = jax.random.normal(k_eps, (B, LATENT_DIM), jnp.float32)

    params = init_params(k_params)
    kparams = prepare_kernel_params(params)

    recon, mu, logvar = cvae_forward(image, label, eps, kparams)
    jax.block_until_ready((recon, mu, logvar))

    # sanity check against pure-JAX reference with matching numerics
    recon_r, mu_r, logvar_r = cvae_forward_ref(image, label, eps, params)
    assert recon.shape == (B, 1, 28, 28)
    assert mu.shape == (B, LATENT_DIM) and logvar.shape == (B, LATENT_DIM)
    assert jnp.allclose(mu, mu_r, atol=1e-4, rtol=1e-4)
    assert jnp.allclose(logvar, logvar_r, atol=1e-4, rtol=1e-4)
    assert jnp.allclose(recon, recon_r, atol=1e-3, rtol=1e-3)

    print("KERNEL_OK")
</pallas_src>

<mosaic_0001>
module attributes {stable_mosaic.version = 11 : i64} {
  func.func @_cvae_kernel(%arg0: i32, %arg1: memref<8x896xbf16, #tpu.memory_space<vmem>>, %arg2: memref<8x13xf32, #tpu.memory_space<vmem>>, %arg3: memref<10x16xf32, #tpu.memory_space<vmem>>, %arg4: memref<1x16xf32, #tpu.memory_space<vmem>>, %arg5: memref<896x128xbf16, #tpu.memory_space<vmem>>, %arg6: memref<16x128xf32, #tpu.memory_space<vmem>>, %arg7: memref<1x128xf32, #tpu.memory_space<vmem>>, %arg8: memref<128x6xf32, #tpu.memory_space<vmem>>, %arg9: memref<1x6xf32, #tpu.memory_space<vmem>>, %arg10: memref<10x16xf32, #tpu.memory_space<vmem>>, %arg11: memref<1x16xf32, #tpu.memory_space<vmem>>, %arg12: memref<3x128xf32, #tpu.memory_space<vmem>>, %arg13: memref<16x128xf32, #tpu.memory_space<vmem>>, %arg14: memref<1x128xf32, #tpu.memory_space<vmem>>, %arg15: memref<128x896xbf16, #tpu.memory_space<vmem>>, %arg16: memref<1x896xf32, #tpu.memory_space<vmem>>, %arg17: memref<8x896xf32, #tpu.memory_space<vmem>>, %arg18: memref<8x6xf32, #tpu.memory_space<vmem>>) attributes {dimension_semantics = [#tpu.dimension_semantics<parallel>], iteration_bounds = array<i64: 1>, scalar_prefetch = 0 : i64, scratch_operands = 0 : i64, tpu.core_type = #tpu.core_type<tc>, window_params = [{transform_indices = @transform_0, window_bounds = array<i64: 8, 896>}, {transform_indices = @transform_1, window_bounds = array<i64: 8, 13>}, {pipeline_mode = #tpu.pipeline_mode<synchronous>, transform_indices = @transform_2, window_bounds = array<i64: 10, 16>}, {pipeline_mode = #tpu.pipeline_mode<synchronous>, transform_indices = @transform_3, window_bounds = array<i64: 1, 16>}, {pipeline_mode = #tpu.pipeline_mode<synchronous>, transform_indices = @transform_4, window_bounds = array<i64: 896, 128>}, {pipeline_mode = #tpu.pipeline_mode<synchronous>, transform_indices = @transform_5, window_bounds = array<i64: 16, 128>}, {pipeline_mode = #tpu.pipeline_mode<synchronous>, transform_indices = @transform_6, window_bounds = array<i64: 1, 128>}, {pipeline_mode = #tpu.pipeline_mode<synchronous>, transform_indices = @transform_7, window_bounds = array<i64: 128, 6>}, {pipeline_mode = #tpu.pipeline_mode<synchronous>, transform_indices = @transform_8, window_bounds = array<i64: 1, 6>}, {pipeline_mode = #tpu.pipeline_mode<synchronous>, transform_indices = @transform_9, window_bounds = array<i64: 10, 16>}, {pipeline_mode = #tpu.pipeline_mode<synchronous>, transform_indices = @transform_10, window_bounds = array<i64: 1, 16>}, {pipeline_mode = #tpu.pipeline_mode<synchronous>, transform_indices = @transform_11, window_bounds = array<i64: 3, 128>}, {pipeline_mode = #tpu.pipeline_mode<synchronous>, transform_indices = @transform_12, window_bounds = array<i64: 16, 128>}, {pipeline_mode = #tpu.pipeline_mode<synchronous>, transform_indices = @transform_13, window_bounds = array<i64: 1, 128>}, {pipeline_mode = #tpu.pipeline_mode<synchronous>, transform_indices = @transform_14, window_bounds = array<i64: 128, 896>}, {pipeline_mode = #tpu.pipeline_mode<synchronous>, transform_indices = @transform_15, window_bounds = array<i64: 1, 896>}, {transform_indices = @transform_16, window_bounds = array<i64: 8, 896>}, {transform_indices = @transform_17, window_bounds = array<i64: 8, 6>}]} {
    %c0 = arith.constant 0 : index
    %c0_0 = arith.constant 0 : index
    %0 = vector.load %arg1[%c0, %c0_0] : memref<8x896xbf16, #tpu.memory_space<vmem>>, vector<8x896xbf16>
    %c0_1 = arith.constant 0 : index
    %c0_2 = arith.constant 0 : index
    %1 = vector.load %arg2[%c0_1, %c0_2] : memref<8x13xf32, #tpu.memory_space<vmem>>, vector<8x13xf32>
    %2 = vector.extract_strided_slice %1 {offsets = [0, 0], sizes = [8, 10], strides = [1, 1]} : vector<8x13xf32> to vector<8x10xf32>
    %3 = vector.extract_strided_slice %1 {offsets = [0, 10], sizes = [8, 3], strides = [1, 1]} : vector<8x13xf32> to vector<8x3xf32>
    %c0_3 = arith.constant 0 : index
    %c0_4 = arith.constant 0 : index
    %4 = vector.load %arg3[%c0_3, %c0_4] : memref<10x16xf32, #tpu.memory_space<vmem>>, vector<10x16xf32>
    %cst = arith.constant dense<0.000000e+00> : vector<8x16xf32>
    %5 = tpu.matmul %2, %4, %cst {dimension_numbers = #tpu.dot_dimension_numbers<[1], [0], [0], [1], [0, 0, 1, 1], [], []>} : vector<8x10xf32>, vector<10x16xf32>, vector<8x16xf32> -> vector<8x16xf32>
    %c0_5 = arith.constant 0 : index
    %c0_6 = arith.constant 0 : index
    %6 = vector.load %arg4[%c0_5, %c0_6] : memref<1x16xf32, #tpu.memory_space<vmem>>, vector<1x16xf32>
    %7 = vector.broadcast %6 : vector<1x16xf32> to vector<8x16xf32>
    %8 = arith.addf %5, %7 : vector<8x16xf32>
    %cst_7 = arith.constant 0.000000e+00 : f32
    %9 = vector.broadcast %cst_7 : f32 to vector<8x16xf32>
    %10 = arith.maximumf %8, %9 : vector<8x16xf32>
    %c0_8 = arith.constant 0 : index
    %c0_9 = arith.constant 0 : index
    %11 = vector.load %arg5[%c0_8, %c0_9] : memref<896x128xbf16, #tpu.memory_space<vmem>>, vector<896x128xbf16>
    %cst_10 = arith.constant dense<0.000000e+00> : vector<8x128xf32>
    %12 = tpu.matmul %0, %11, %cst_10 {dimension_numbers = #tpu.dot_dimension_numbers<[1], [0], [0], [1], [0, 0, 1, 1], [], []>} : vector<8x896xbf16>, vector<896x128xbf16>, vector<8x128xf32> -> vector<8x128xf32>
    %c0_11 = arith.constant 0 : index
    %c0_12 = arith.constant 0 : index
    %13 = vector.load %arg6[%c0_11, %c0_12] : memref<16x128xf32, #tpu.memory_space<vmem>>, vector<16x128xf32>
    %cst_13 = arith.constant dense<0.000000e+00> : vector<8x128xf32>
    %14 = tpu.matmul %10, %13, %cst_13 {dimension_numbers = #tpu.dot_dimension_numbers<[1], [0], [0], [1], [0, 0, 1, 1], [], []>} : vector<8x16xf32>, vector<16x128xf32>, vector<8x128xf32> -> vector<8x128xf32>
    %15 = arith.addf %12, %14 : vector<8x128xf32>
    %c0_14 = arith.constant 0 : index
    %c0_15 = arith.constant 0 : index
    %16 = vector.load %arg7[%c0_14, %c0_15] : memref<1x128xf32, #tpu.memory_space<vmem>>, vector<1x128xf32>
    %17 = vector.broadcast %16 : vector<1x128xf32> to vector<8x128xf32>
    %18 = arith.addf %15, %17 : vector<8x128xf32>
    %cst_16 = arith.constant 0.000000e+00 : f32
    %19 = vector.broadcast %cst_16 : f32 to vector<8x128xf32>
    %20 = arith.maximumf %18, %19 : vector<8x128xf32>
    %c0_17 = arith.constant 0 : index
    %c0_18 = arith.constant 0 : index
    %21 = vector.load %arg8[%c0_17, %c0_18] : memref<128x6xf32, #tpu.memory_space<vmem>>, vector<128x6xf32>
    %cst_19 = arith.constant dense<0.000000e+00> : vector<8x6xf32>
    %22 = tpu.matmul %20, %21, %cst_19 {dimension_numbers = #tpu.dot_dimension_numbers<[1], [0], [0], [1], [0, 0, 1, 1], [], []>} : vector<8x128xf32>, vector<128x6xf32>, vector<8x6xf32> -> vector<8x6xf32>
    %c0_20 = arith.constant 0 : index
    %c0_21 = arith.constant 0 : index
    %23 = vector.load %arg9[%c0_20, %c0_21] : memref<1x6xf32, #tpu.memory_space<vmem>>, vector<1x6xf32>
    %24 = vector.broadcast %23 : vector<1x6xf32> to vector<8x6xf32>
    %25 = arith.addf %22, %24 : vector<8x6xf32>
    %26 = vector.extract_strided_slice %25 {offsets = [0, 0], sizes = [8, 3], strides = [1, 1]} : vector<8x6xf32> to vector<8x3xf32>
    %27 = vector.extract_strided_slice %25 {offsets = [0, 3], sizes = [8, 3], strides = [1, 1]} : vector<8x6xf32> to vector<8x3xf32>
    %cst_22 = arith.constant 5.000000e-01 : f32
    %28 = vector.broadcast %cst_22 : f32 to vector<8x3xf32>
    %29 = arith.mulf %28, %27 : vector<8x3xf32>
    %30 = math.exp %29 : vector<8x3xf32>
    %31 = arith.mulf %30, %3 : vector<8x3xf32>
    %32 = arith.addf %26, %31 : vector<8x3xf32>
    %c0_23 = arith.constant 0 : index
    %c0_24 = arith.constant 0 : index
    %33 = vector.load %arg10[%c0_23, %c0_24] : memref<10x16xf32, #tpu.memory_space<vmem>>, vector<10x16xf32>
    %cst_25 = arith.constant dense<0.000000e+00> : vector<8x16xf32>
    %34 = tpu.matmul %2, %33, %cst_25 {dimension_numbers = #tpu.dot_dimension_numbers<[1], [0], [0], [1], [0, 0, 1, 1], [], []>} : vector<8x10xf32>, vector<10x16xf32>, vector<8x16xf32> -> vector<8x16xf32>
    %c0_26 = arith.constant 0 : index
    %c0_27 = arith.constant 0 : index
    %35 = vector.load %arg11[%c0_26, %c0_27] : memref<1x16xf32, #tpu.memory_space<vmem>>, vector<1x16xf32>
    %36 = vector.broadcast %35 : vector<1x16xf32> to vector<8x16xf32>
    %37 = arith.addf %34, %36 : vector<8x16xf32>
    %cst_28 = arith.constant 0.000000e+00 : f32
    %38 = vector.broadcast %cst_28 : f32 to vector<8x16xf32>
    %39 = arith.maximumf %37, %38 : vector<8x16xf32>
    %c0_29 = arith.constant 0 : index
    %c0_30 = arith.constant 0 : index
    %40 = vector.load %arg12[%c0_29, %c0_30] : memref<3x128xf32, #tpu.memory_space<vmem>>, vector<3x128xf32>
    %cst_31 = arith.constant dense<0.000000e+00> : vector<8x128xf32>
    %41 = tpu.matmul %32, %40, %cst_31 {dimension_numbers = #tpu.dot_dimension_numbers<[1], [0], [0], [1], [0, 0, 1, 1], [], []>} : vector<8x3xf32>, vector<3x128xf32>, vector<8x128xf32> -> vector<8x128xf32>
    %c0_32 = arith.constant 0 : index
    %c0_33 = arith.constant 0 : index
    %42 = vector.load %arg13[%c0_32, %c0_33] : memref<16x128xf32, #tpu.memory_space<vmem>>, vector<16x128xf32>
    %cst_34 = arith.constant dense<0.000000e+00> : vector<8x128xf32>
    %43 = tpu.matmul %39, %42, %cst_34 {dimension_numbers = #tpu.dot_dimension_numbers<[1], [0], [0], [1], [0, 0, 1, 1], [], []>} : vector<8x16xf32>, vector<16x128xf32>, vector<8x128xf32> -> vector<8x128xf32>
    %44 = arith.addf %41, %43 : vector<8x128xf32>
    %c0_35 = arith.constant 0 : index
    %c0_36 = arith.constant 0 : index
    %45 = vector.load %arg14[%c0_35, %c0_36] : memref<1x128xf32, #tpu.memory_space<vmem>>, vector<1x128xf32>
    %46 = vector.broadcast %45 : vector<1x128xf32> to vector<8x128xf32>
    %47 = arith.addf %44, %46 : vector<8x128xf32>
    %cst_37 = arith.constant 0.000000e+00 : f32
    %48 = vector.broadcast %cst_37 : f32 to vector<8x128xf32>
    %49 = arith.maximumf %47, %48 : vector<8x128xf32>
    %50 = arith.truncf %49 : vector<8x128xf32> to vector<8x128xbf16>
    %c0_38 = arith.constant 0 : index
    %c0_39 = arith.constant 0 : index
    %51 = vector.load %arg15[%c0_38, %c0_39] : memref<128x896xbf16, #tpu.memory_space<vmem>>, vector<128x896xbf16>
    %cst_40 = arith.constant dense<0.000000e+00> : vector<8x896xf32>
    %52 = tpu.matmul %50, %51, %cst_40 {dimension_numbers = #tpu.dot_dimension_numbers<[1], [0], [0], [1], [0, 0, 1, 1], [], []>} : vector<8x128xbf16>, vector<128x896xbf16>, vector<8x896xf32> -> vector<8x896xf32>
    %c0_41 = arith.constant 0 : index
    %c0_42 = arith.constant 0 : index
    %53 = vector.load %arg16[%c0_41, %c0_42] : memref<1x896xf32, #tpu.memory_space<vmem>>, vector<1x896xf32>
    %54 = vector.broadcast %53 : vector<1x896xf32> to vector<8x896xf32>
    %55 = arith.addf %52, %54 : vector<8x896xf32>
    %56 = arith.negf %55 : vector<8x896xf32>
    %57 = math.exp %56 : vector<8x896xf32>
    %cst_43 = arith.constant 1.000000e+00 : f32
    %58 = vector.broadcast %cst_43 : f32 to vector<8x896xf32>
    %59 = arith.addf %58, %57 : vector<8x896xf32>
    %60 = arith.divf %58, %59 : vector<8x896xf32>
    %c0_44 = arith.constant 0 : index
    %c0_45 = arith.constant 0 : index
    %61 = vector.load %arg17[%c0_44, %c0_45] : memref<8x896xf32, #tpu.memory_space<vmem>>, vector<8x896xf32>
    tpu.vector_store %arg17[%c0_44, %c0_45], %60 {strides = array<i32>} : memref<8x896xf32, #tpu.memory_space<vmem>>, vector<8x896xf32>,
    %c0_46 = arith.constant 0 : index
    %c0_47 = arith.constant 0 : index
    %62 = vector.load %arg18[%c0_46, %c0_47] : memref<8x6xf32, #tpu.memory_space<vmem>>, vector<8x6xf32>
    tpu.vector_store %arg18[%c0_46, %c0_47], %25 {strides = array<i32>} : memref<8x6xf32, #tpu.memory_space<vmem>>, vector<8x6xf32>,
    return
  }
  func.func @transform_0(%arg0: i32) -> (i32, i32) {
    %c0_i32 = arith.constant 0 : i32
    %c0_i32_0 = arith.constant 0 : i32
    return %arg0, %c0_i32 : i32, i32
  }
  func.func @transform_1(%arg0: i32) -> (i32, i32) {
    %c0_i32 = arith.constant 0 : i32
    %c0_i32_0 = arith.constant 0 : i32
    return %arg0, %c0_i32 : i32, i32
  }
  func.func @transform_2(%arg0: i32) -> (i32, i32) {
    %c0_i32 = arith.constant 0 : i32
    %c0_i32_0 = arith.constant 0 : i32
    %c0_i32_1 = arith.constant 0 : i32
    return %c0_i32, %c0_i32_0 : i32, i32
  }
  func.func @transform_3(%arg0: i32) -> (i32, i32) {
    %c0_i32 = arith.constant 0 : i32
    %c0_i32_0 = arith.constant 0 : i32
    %c0_i32_1 = arith.constant 0 : i32
    return %c0_i32, %c0_i32_0 : i32, i32
  }
  func.func @transform_4(%arg0: i32) -> (i32, i32) {
    %c0_i32 = arith.constant 0 : i32
    %c0_i32_0 = arith.constant 0 : i32
    %c0_i32_1 = arith.constant 0 : i32
    return %c0_i32, %c0_i32_0 : i32, i32
  }
  func.func @transform_5(%arg0: i32) -> (i32, i32) {
    %c0_i32 = arith.constant 0 : i32
    %c0_i32_0 = arith.constant 0 : i32
    %c0_i32_1 = arith.constant 0 : i32
    return %c0_i32, %c0_i32_0 : i32, i32
  }
  func.func @transform_6(%arg0: i32) -> (i32, i32) {
    %c0_i32 = arith.constant 0 : i32
    %c0_i32_0 = arith.constant 0 : i32
    %c0_i32_1 = arith.constant 0 : i32
    return %c0_i32, %c0_i32_0 : i32, i32
  }
  func.func @transform_7(%arg0: i32) -> (i32, i32) {
    %c0_i32 = arith.constant 0 : i32
    %c0_i32_0 = arith.constant 0 : i32
    %c0_i32_1 = arith.constant 0 : i32
    return %c0_i32, %c0_i32_0 : i32, i32
  }
  func.func @transform_8(%arg0: i32) -> (i32, i32) {
    %c0_i32 = arith.constant 0 : i32
    %c0_i32_0 = arith.constant 0 : i32
    %c0_i32_1 = arith.constant 0 : i32
    return %c0_i32, %c0_i32_0 : i32, i32
  }
  func.func @transform_9(%arg0: i32) -> (i32, i32) {
    %c0_i32 = arith.constant 0 : i32
    %c0_i32_0 = arith.constant 0 : i32
    %c0_i32_1 = arith.constant 0 : i32
    return %c0_i32, %c0_i32_0 : i32, i32
  }
  func.func @transform_10(%arg0: i32) -> (i32, i32) {
    %c0_i32 = arith.constant 0 : i32
    %c0_i32_0 = arith.constant 0 : i32
    %c0_i32_1 = arith.constant 0 : i32
    return %c0_i32, %c0_i32_0 : i32, i32
  }
  func.func @transform_11(%arg0: i32) -> (i32, i32) {
    %c0_i32 = arith.constant 0 : i32
    %c0_i32_0 = arith.constant 0 : i32
    %c0_i32_1 = arith.constant 0 : i32
    return %c0_i32, %c0_i32_0 : i32, i32
  }
  func.func @transform_12(%arg0: i32) -> (i32, i32) {
    %c0_i32 = arith.constant 0 : i32
    %c0_i32_0 = arith.constant 0 : i32
    %c0_i32_1 = arith.constant 0 : i32
    return %c0_i32, %c0_i32_0 : i32, i32
  }
  func.func @transform_13(%arg0: i32) -> (i32, i32) {
    %c0_i32 = arith.constant 0 : i32
    %c0_i32_0 = arith.constant 0 : i32
    %c0_i32_1 = arith.constant 0 : i32
    return %c0_i32, %c0_i32_0 : i32, i32
  }
  func.func @transform_14(%arg0: i32) -> (i32, i32) {
    %c0_i32 = arith.constant 0 : i32
    %c0_i32_0 = arith.constant 0 : i32
    %c0_i32_1 = arith.constant 0 : i32
    return %c0_i32, %c0_i32_0 : i32, i32
  }
  func.func @transform_15(%arg0: i32) -> (i32, i32) {
    %c0_i32 = arith.constant 0 : i32
    %c0_i32_0 = arith.constant 0 : i32
    %c0_i32_1 = arith.constant 0 : i32
    return %c0_i32, %c0_i32_0 : i32, i32
  }
  func.func @transform_16(%arg0: i32) -> (i32, i32) {
    %c0_i32 = arith.constant 0 : i32
    %c0_i32_0 = arith.constant 0 : i32
    return %arg0, %c0_i32 : i32, i32
  }
  func.func @transform_17(%arg0: i32) -> (i32, i32) {
    %c0_i32 = arith.constant 0 : i32
    %c0_i32_0 = arith.constant 0 : i32
    return %arg0, %c0_i32 : i32, i32
  }
}

</mosaic_0001>

<bundles_post_ra>
// kernel: cvae_forward.1
= control target key start
LH: loop header
LB: loop body
LE: loop exit
PB: predicated region body
PF: predicated region fallthrough
CT: control target
= control target key end

     0   :  { %s2426_s0 = inlined_call_operand.vmem [shape: bf16[8,896], index: 0, kind: input, shape index: {}]   ;;  %s2427_s1 = inlined_call_operand.vmem [shape: f32[8,13], index: 1, kind: input, shape index: {}]   ;;  %s2428_s2 = inlined_call_operand.vmem [shape: f32[10,16], index: 2, kind: input, shape index: {}]   ;;  %s2429_s3 = inlined_call_operand.vmem [shape: f32[1,16], index: 3, kind: input, shape index: {}]   ;;  %s2430_s4 = inlined_call_operand.hbm [shape: bf16[896,128], index: 4, kind: input, shape index: {}]   ;;  %s2431_s5 = inlined_call_operand.vmem [shape: f32[16,128], index: 5, kind: input, shape index: {}]   ;;  %s2432_s6 = inlined_call_operand.vmem [shape: f32[1,128], index: 6, kind: input, shape index: {}]   ;;  %s2433_s7 = inlined_call_operand.vmem [shape: f32[128,6], index: 7, kind: input, shape index: {}]   ;;  %s2434_s8 = inlined_call_operand.vmem [shape: f32[1,6], index: 8, kind: input, shape index: {}]   ;;  %s2435_s9 = inlined_call_operand.vmem [shape: f32[10,16], index: 9, kind: input, shape index: {}]   ;;  %s2436_s10 = inlined_call_operand.vmem [shape: f32[1,16], index: 10, kind: input, shape index: {}]   ;;  %s2437_s11 = inlined_call_operand.vmem [shape: f32[3,128], index: 11, kind: input, shape index: {}]   ;;  %s2438_s12 = inlined_call_operand.vmem [shape: f32[16,128], index: 12, kind: input, shape index: {}]   ;;  %s2439_s13 = inlined_call_operand.vmem [shape: f32[1,128], index: 13, kind: input, shape index: {}]   ;;  %s2440_s14 = inlined_call_operand.hbm [shape: bf16[128,896], index: 14, kind: input, shape index: {}]   ;;  %s2441_s15 = inlined_call_operand.vmem [shape: f32[1,896], index: 15, kind: input, shape index: {}]   ;;  %s2442_s16 = inlined_call_operand.vmem [shape: f32[8,896], index: 16, kind: output, shape index: {0}]   ;;  %s2443_s17 = inlined_call_operand.vmem [shape: f32[8,6], index: 17, kind: output, shape index: {1}]  }
   0x1   :  { %2445 = sst [smem:[#allocation8_spill]] %s2426_s0 }
   0x2   :  { %2446 = sst [smem:[#allocation9_spill]] %s2427_s1 }
   0x3   :  { %23 = vsyncpa [#allocation3], 0  ;;  %s37_s26 = sshll.u32 %s2430_s4, 4  ;;  %s38_s26 = int_to_ptr.hbm [resolvable:$true] %s37_s26 }
   0x4   :  { %24 = vsyncpa [#allocation5], 0  ;;  %s2147_s27 = smov [#allocation2]   ;;  %s68_s30 = sshll.u32 %s2440_s14, 4  ;;  %s69_s30 = int_to_ptr.hbm [resolvable:$true] %s68_s30 }
   0x5   :  { %s39_s28 = sshll.u32 %s2147_s27, 4  ;;  %s2148_s18 = smov 64   ;;  %s40_s28 = int_to_ptr.vmem [resolvable:$true] %s39_s28 }
   0x6   :  { %s2149_s19 = smov 4   ;;  %s2150_s1 = smov [#allocation4]  }
   0x7   :  { %45 = dma.hbm_to_vmem [thread:$0]  %s38_s26, 7168, %s40_s28, [#allocation3], %s2148_s18, %s2148_s18, %s2149_s19  }
   0x8   :  { %s70_s20 = sshll.u32 %s2150_s1, 4  ;;  %s2151_s21 = smov 448   ;;  %s71_s20 = int_to_ptr.vmem [resolvable:$true] %s70_s20 }
   0x9   :  { %s2152_s22 = smov 28  }
   0xa   :  { %76 = dma.hbm_to_vmem [thread:$0]  %s69_s30, 7168, %s71_s20, [#allocation5], %s2151_s21, %s2151_s21, %s2152_s22  }
   0xb   :  { %2143 = dma.done.wait [#allocation3], 7168  }
   0xc   :  { %2144 = vsyncadd [#allocation3], 4294960128 }
   0xd   :  { %2145 = dma.done.wait [#allocation5], 7168  }
   0xe   :  { %2146 = vsyncadd [#allocation5], 4294960128  ;;  %vm102_vm0 = vcmask 1041408   ;;  %v93_v0 = vld [vmem:[%s2428_s2 + $0x8] sm:$0x3]  ;;  %v92_v1 = vld [vmem:[%s2428_s2] sm:$0xff] }
   0xf   :  { %1477 = vmatpush.msk.msra.mxu0 %vm102_vm0, %v93_v0  ;;  %s2447_s27 = sld [smem:[#allocation9_spill]]  ;;  %vm98_vm1 = vcmask 80896   ;;  %v1947_v3 = vld [vmem:[#allocation2 + $0x38] sm:$0xff]  ;;  %v1946_v5 = vld [vmem:[#allocation2 + $0x30] sm:$0xff]  ;;  %v1945_v9 = vld [vmem:[#allocation2 + $0x28] sm:$0xff]  ;;  %vm241_vm2 = vcmask 130048  }
  0x10   :  { %v1955_v4 = vld [vmem:[#allocation2 + $0x78] sm:$0xff]  ;;  %626 = vmatpush.bf16.msra.mxu2 %v1947_v3  ;;  %v1954_v7 = vld [vmem:[#allocation2 + $0x70] sm:$0xff]  ;;  %v1953_v10 = vld [vmem:[#allocation2 + $0x68] sm:$0xff]  ;;  %s2448_s18 = sld [smem:[#allocation8_spill]]  ;;  %s2153_s30 = smov 121   ;;  %vm835_vm3 = vcmask 1042432  }
  0x11   :  { %121 = vmatpush.msra.mxu0 %v92_v1  ;;  %v1963_v6 = vld [vmem:[#allocation2 + $0xb8] sm:$0xff]  ;;  %639 = vmatpush.bf16.msra.mxu3 %v1955_v4  ;;  %v1962_v8 = vld [vmem:[#allocation2 + $0xb0] sm:$0xff]  ;;  %v1961_v11 = vld [vmem:[#allocation2 + $0xa8] sm:$0xff]  ;;  %vm1465_vm4 = vcmask 48128   ;;  %vm831_vm5 = vcmask 23552  }
  0x12   :  { %v240_v12 = vld [vmem:[%s2431_s5 + $0x8] sm:$0xff]  ;;  %v1944_v13 = vld [vmem:[#allocation2 + $0x20] sm:$0xff]  ;;  %v1971_v16 = vld [vmem:[#allocation2 + $0xf8] sm:$0xff] }
  0x13   :  { %652 = vmatpush.bf16.msrb.mxu0 %v1963_v6  ;;  %259 = vmatpush.msra.mxu1 %v240_v12  ;;  %v239_v14 = vld [vmem:[%s2431_s5] sm:$0xff]  ;;  %v1943_v17 = vld [vmem:[#allocation2 + $0x18] sm:$0xff]  ;;  %v1970_v19 = vld [vmem:[#allocation2 + $0xf0] sm:$0xff] }
  0x14   :  { %627 = vmatpush.bf16.msra.mxu2 %v1946_v5  ;;  %v1952_v15 = vld [vmem:[#allocation2 + $0x60] sm:$0xff]  ;;  %v1951_v20 = vld [vmem:[#allocation2 + $0x58] sm:$0xff]  ;;  %v1969_v22 = vld [vmem:[#allocation2 + $0xe8] sm:$0xff] }
  0x15   :  { %v2261_v2 = vld [vmem:[%s2447_s27] sm:$0xff]  ;;  %640 = vmatpush.bf16.msra.mxu3 %v1954_v7  ;;  %260 = vmatpush.msra.mxu1 %v239_v14  ;;  %v1959_v21 = vld [vmem:[#allocation2 + $0x98] sm:$0xff]  ;;  %v1942_v23 = vld [vmem:[#allocation2 + $0x10] sm:$0xff] }
  0x16   :  { %1478 = vmatmul.msk.f32.vlgmr.msra.gmra.mxu0 %vm98_vm1, %v2261_v2  ;;  %v1960_v18 = vld [vmem:[#allocation2 + $0xa0] sm:$0xff]  ;;  %v1950_v24 = vld [vmem:[#allocation2 + $0x50] sm:$0xff]  ;;  %v1941_v27 = vld [vmem:[#allocation2 + $0x8] sm:$0xff]  ;;  %766 = vrot.lane.b32.xlu0 %v2261_v2, %s2153_s30 }
  0x17   :  { %653 = vmatpush.bf16.msrb.mxu0 %v1962_v8  ;;  %665 = vmatpush.bf16.msrb.mxu1 %v1971_v16  ;;  %v1958_v25 = vld [vmem:[#allocation2 + $0x90] sm:$0xff]  ;;  %v1968_v26 = vld [vmem:[#allocation2 + $0xe0] sm:$0xff]  ;;  %v1949_v29 = vld [vmem:[#allocation2 + $0x48] sm:$0xff] }
  0x18   :  { %628 = vmatpush.bf16.msra.mxu2 %v1945_v9  ;;  %v87_v28 = vld [vmem:[%s2448_s18] sm:$0xff]  ;;  %v1957_v30 = vld [vmem:[#allocation2 + $0x88] sm:$0xff]  ;;  %v1967_v33 = vld [vmem:[#allocation2 + $0xd8] sm:$0xff] }
  0x19   :  { %641 = vmatpush.bf16.msra.mxu3 %v1953_v10  ;;  %v2277_v31 = vld [vmem:[%s2448_s18 + $0x8] sm:$0xff]  ;;  %v269_v32 = vunpack.c.l.b16 %v87_v28  ;;  %v1940_v34 = vld [vmem:[#allocation2] sm:$0xff]  ;;  %v270_v35 = vunpack.c.h.b16 %v87_v28  ;;  %v1979_v36 = vld [vmem:[#allocation2 + $0x138] sm:$0xff] }
  0x1a   :  { %v1948_v37 = vld [vmem:[#allocation2 + $0x40] sm:$0xff]  ;;  %v271_v38 = vunpack.c.l.b16 %v2277_v31  ;;  %v1987_v39 = vld [vmem:[#allocation2 + $0x178] sm:$0xff]  ;;  %v1978_v44 = vld [vmem:[#allocation2 + $0x130] sm:$0xff] }
  0x1b   :  { %654 = vmatpush.bf16.msrb.mxu0 %v1961_v11  ;;  %666 = vmatpush.bf16.msrb.mxu1 %v1970_v19  ;;  %v1956_v40 = vld [vmem:[#allocation2 + $0x80] sm:$0xff]  ;;  %v1995_v41 = vld [vmem:[#allocation2 + $0x1b8] sm:$0xff]  ;;  %v276_v42 = vpack.c.b16 %v269_v32, %v269_v32  ;;  %v277_v43 = vpack.c.b16 %v270_v35, %v270_v35  ;;  %v1986_v46 = vld [vmem:[#allocation2 + $0x170] sm:$0xff] }
  0x1c   :  { %629 = vmatpush.bf16.msra.mxu2 %v1944_v13  ;;  %v278_v45 = vpack.c.b16 %v271_v38, %v271_v38  ;;  %v1994_v47 = vld [vmem:[#allocation2 + $0x1b0] sm:$0xff]  ;;  %v1977_v48 = vld [vmem:[#allocation2 + $0x128] sm:$0xff]  ;;  %v1976_v51 = vld [vmem:[#allocation2 + $0x120] sm:$0xff] }
  0x1d   :  { %642 = vmatpush.bf16.msra.mxu3 %v1952_v15  ;;  %v1985_v49 = vld [vmem:[#allocation2 + $0x168] sm:$0xff]  ;;  %v1984_v52 = vld [vmem:[#allocation2 + $0x160] sm:$0xff]  ;;  %v1975_v54 = vld [vmem:[#allocation2 + $0x118] sm:$0xff] }
  0x1e   :  { %v1993_v50 = vld [vmem:[#allocation2 + $0x1a8] sm:$0xff]  ;;  %v1992_v53 = vld [vmem:[#allocation2 + $0x1a0] sm:$0xff]  ;;  %v1983_v55 = vld [vmem:[#allocation2 + $0x158] sm:$0xff] }
  0x1f   :  { %655 = vmatpush.bf16.msrb.mxu0 %v1960_v18  ;;  %667 = vmatpush.bf16.msrb.mxu1 %v1969_v22  ;;  %v1991_v56 = vld [vmem:[#allocation2 + $0x198] sm:$0xff]  ;;  %v1974_v57 = vld [vmem:[#allocation2 + $0x110] sm:$0xff]  ;;  %v1973_v59 = vld [vmem:[#allocation2 + $0x108] sm:$0xff]  ;;  %v272_v18 = vunpack.c.h.b16 %v2277_v31 }
  0x20   :  { %630 = vmatpush.bf16.msra.mxu2 %v1943_v17  ;;  %v1982_v58 = vld [vmem:[#allocation2 + $0x150] sm:$0xff]  ;;  %v1981_v60 = vld [vmem:[#allocation2 + $0x148] sm:$0xff]  ;;  %v1972_v61 = vld [vmem:[#allocation2 + $0x100] sm:$0xff] }
  0x21   :  { %643 = vmatpush.bf16.msra.mxu3 %v1951_v20  ;;  %v89_v62 = vld [vmem:[%s2448_s18 + $0x10] sm:$0xff]  ;;  %v1980_v0 = vld [vmem:[#allocation2 + $0x140] sm:$0xff]  ;;  %v1989_v7 = vld [vmem:[#allocation2 + $0x188] sm:$0xff] }
  0x22   :  { %v273_v63 = vunpack.c.l.b16 %v89_v62  ;;  %v1990_v1 = vld [vmem:[#allocation2 + $0x190] sm:$0xff]  ;;  %v274_v4 = vunpack.c.h.b16 %v89_v62  ;;  %v1965_v8 = vld [vmem:[#allocation2 + $0xc8] sm:$0xff]  ;;  %v1988_v9 = vld [vmem:[#allocation2 + $0x180] sm:$0xff] }
  0x23   :  { %656 = vmatpush.bf16.msrb.mxu0 %v1959_v21  ;;  %668 = vmatpush.bf16.msrb.mxu1 %v1968_v26  ;;  %v1966_v5 = vld [vmem:[#allocation2 + $0xd0] sm:$0xff]  ;;  %v90_v10 = vld [vmem:[%s2448_s18 + $0x18] sm:$0xf]  ;;  %v1964_v11 = vld [vmem:[#allocation2 + $0xc0] sm:$0xff]  ;;  %v279_v21 = vpack.c.b16 %v272_v18, %v272_v18 }
  0x24   :  { %631 = vmatpush.bf16.msra.mxu2 %v1942_v23  ;;  %v280_v3 = vpack.c.b16 %v273_v63, %v273_v63  ;;  %v281_v6 = vpack.c.b16 %v274_v4, %v274_v4  ;;  %v275_v12 = vunpack.c.l.b16 %v90_v10  ;;  %v2060_v14 = vld [vmem:[%s2429_s3] ss:$0 sm:$0xff]  ;;  %v738_v19 = vld [vmem:[%s2433_s7 + $0x78] sm:$0xff]  ;;  %v737_v20 = vld [vmem:[%s2433_s7 + $0x70] sm:$0xff] }
  0x25   :  { %644 = vmatpush.bf16.msra.mxu3 %v1950_v24  ;;  %v736_v22 = vld [vmem:[%s2433_s7 + $0x68] sm:$0xff]  ;;  %v735_v23 = vld [vmem:[%s2433_s7 + $0x60] sm:$0xff]  ;;  %v734_v24 = vld [vmem:[%s2433_s7 + $0x58] sm:$0xff] }
  0x26   :  { %v282_v13 = vpack.c.b16 %v275_v12, %v275_v12  ;;  %v733_v31 = vld [vmem:[%s2433_s7 + $0x50] sm:$0xff]  ;;  %v732_v32 = vld [vmem:[%s2433_s7 + $0x48] sm:$0xff]  ;;  %v730_v35 = vld [vmem:[%s2433_s7 + $0x38] sm:$0xff] }
  0x27   :  { %657 = vmatpush.bf16.msrb.mxu0 %v1958_v25  ;;  %669 = vmatpush.bf16.msrb.mxu1 %v1967_v33  ;;  %v729_v38 = vld [vmem:[%s2433_s7 + $0x30] sm:$0xff]  ;;  %v2063_v63 = vld [vmem:[%s2436_s10] ss:$0 sm:$0xff]  ;;  %v1909_v18 = vld [vmem:[#allocation4 + $0x1a4] sm:$0xf0] }
  0x28   :  { %632 = vmatpush.bf16.msra.mxu2 %v1941_v27 }
  0x29   :  { %645 = vmatpush.bf16.msra.mxu3 %v1949_v29 }
  0x2b   :  { %658 = vmatpush.bf16.msrb.mxu0 %v1957_v30  ;;  %670 = vmatpush.bf16.msrb.mxu1 %v1966_v5 }
  0x2c   :  { %633 = vmatpush.bf16.msra.mxu2 %v1940_v34  ;;  %v731_v34 = vld [vmem:[%s2433_s7 + $0x40] sm:$0xff] }
  0x2d   :  { %646 = vmatpush.bf16.msra.mxu3 %v1948_v37 }
  0x2f   :  { %659 = vmatpush.bf16.msrb.mxu0 %v1956_v40  ;;  %634 = vmatmul.bf16.vlgmr.msra.gmra.mxu2 %v276_v42 }
  0x30   :  { %678 = vmatpush.bf16.msrb.mxu2 %v1979_v36  ;;  %647 = vmatmul.bf16.vlgmr.msra.gmra.mxu3 %v277_v43  ;;  %v726_v43 = vld [vmem:[%s2433_s7 + $0x18] sm:$0xff] }
  0x31   :  { %691 = vmatpush.bf16.msrb.mxu3 %v1987_v39  ;;  %671 = vmatpush.bf16.msrb.mxu1 %v1965_v8  ;;  %v728_v39 = vld [vmem:[%s2433_s7 + $0x28] sm:$0xff] }
  0x32   :  { %660 = vmatmul.bf16.vlgmr.msrb.gmra.mxu0 %v278_v45  ;;  %v725_v45 = vld [vmem:[%s2433_s7 + $0x10] sm:$0xff] }
  0x33   :  { %704 = vmatpush.bf16.msra.mxu0 %v1995_v41  ;;  %v727_v41 = vld [vmem:[%s2433_s7 + $0x20] sm:$0xff] }
  0x34   :  { %679 = vmatpush.bf16.msrb.mxu2 %v1978_v44 }
  0x35   :  { %692 = vmatpush.bf16.msrb.mxu3 %v1986_v46  ;;  %672 = vmatpush.bf16.msrb.mxu1 %v1964_v11  ;;  %v724_v46 = vld [vmem:[%s2433_s7 + $0x8] sm:$0xff] }
  0x37   :  { %705 = vmatpush.bf16.msra.mxu0 %v1994_v47  ;;  %v723_v47 = vld [vmem:[%s2433_s7] sm:$0xff] }
  0x38   :  { %680 = vmatpush.bf16.msrb.mxu2 %v1977_v48  ;;  %v776_v48 = vld [vmem:[%s2435_s9 + $0x8] sm:$0x3] }
  0x39   :  { %693 = vmatpush.bf16.msrb.mxu3 %v1985_v49  ;;  %v775_v49 = vld [vmem:[%s2435_s9] sm:$0xff] }
  0x3b   :  { %706 = vmatpush.bf16.msra.mxu0 %v1993_v50 }
  0x3c   :  { %681 = vmatpush.bf16.msrb.mxu2 %v1976_v51 }
  0x3d   :  { %694 = vmatpush.bf16.msrb.mxu3 %v1984_v52 }
  0x3f   :  { %707 = vmatpush.bf16.msra.mxu0 %v1992_v53 }
  0x40   :  { %682 = vmatpush.bf16.msrb.mxu2 %v1975_v54 }
  0x41   :  { %695 = vmatpush.bf16.msrb.mxu3 %v1983_v55 }
  0x43   :  { %708 = vmatpush.bf16.msra.mxu0 %v1991_v56 }
  0x44   :  { %683 = vmatpush.bf16.msrb.mxu2 %v1974_v57 }
  0x45   :  { %696 = vmatpush.bf16.msrb.mxu3 %v1982_v58  ;;  %v2061_v58 = vld [vmem:[%s2432_s6] ss:$0 sm:$0xff] }
  0x47   :  { %709 = vmatpush.bf16.msra.mxu0 %v1990_v1  ;;  %v806_v1 = vld [vmem:[%s2438_s12] sm:$0xff] }
  0x48   :  { %684 = vmatpush.bf16.msrb.mxu2 %v1973_v59 }
  0x49   :  { %697 = vmatpush.bf16.msrb.mxu3 %v1981_v60 }
  0x4b   :  { %710 = vmatpush.bf16.msra.mxu0 %v1989_v7 }
  0x4c   :  { %685 = vmatpush.bf16.msrb.mxu2 %v1972_v61 }
  0x4d   :  { %698 = vmatpush.bf16.msrb.mxu3 %v1980_v0 }
  0x4f   :  { %686 = vmatmul.bf16.vlgmr.msrb.gmra.mxu2 %v280_v3  ;;  %711 = vmatpush.bf16.msra.mxu0 %v1988_v9  ;;  %v805_v3 = vld [vmem:[%s2437_s11] sm:$0x7] }
  0x50   :  { %699 = vmatmul.bf16.vlgmr.msrb.gmra.mxu3 %v281_v6  ;;  %v2062_v6 = vld [vmem:[%s2434_s8] ss:$0 sm:$0xff] }
  0x51   :  { %1704 = vmatpush.msk.msra.mxu3 %vm102_vm0, %v776_v48  ;;  %v2028_v48 = vld [vmem:[#allocation4 + $0x100] sm:$0xf0] }
  0x52   :  { %712 = vmatmul.bf16.vlgmr.msra.gmra.mxu0 %v282_v13 }
  0x53   :  { %799 = vmatpush.msra.mxu3 %v775_v49 }
  0x60   :  { %1705 = vmatmul.msk.f32.vlgmr.msra.gmra.mxu3 %vm98_vm1, %v2261_v2  ;;  %v807_v2 = vld [vmem:[%s2438_s12 + $0x8] sm:$0xff]  ;;  %s2154_s12 = smov 125  }
  0x61   :  { %825 = vmatpush.msrb.mxu3 %v807_v2  ;;  %v1861_v2 = vld [vmem:[#allocation4 + $0x13c] sm:$0xf0] }
  0x63   :  { %826 = vmatpush.msrb.mxu3 %v806_v1  ;;  %v2013_v1 = vld [vmem:[#allocation4 + $0x88] sm:$0xf0] }
  0x65   :  { %1707 = vmatpush.msk.msra.mxu3 %vm835_vm3, %v805_v3 }
  0x88   :  { %v767_v11 = vpop.permute.xlu0 %766 }
  0x93   :  { %v123_v15 = vpop.f32.mrf.mxu0 }
  0x94   :  { %v124_v16 = vadd.f32 %v2060_v14, %v123_v15  ;;  %v1907_v14 = vld [vmem:[#allocation4 + $0x188] sm:$0xf]  ;;  %v2048_v15 = vld [vmem:[#allocation4 + $0x1a0] sm:$0xf0] }
  0x96   :  { %v126_v17 = vmax.f32 %v124_v16, 0.0  ;;  %v2045_v16 = vld [vmem:[#allocation4 + $0x18c] sm:$0xf] }
  0x98   :  { %1479 = vmatmul.msk.f32.vlgmr.msra.gmra.mxu1 %vm241_vm2, %v126_v17  ;;  %v1908_v17 = vor.u32 %v2048_v15, %v1907_v14  ;;  %v1739_v14 = vld [vmem:[#allocation4 + $0x38] sm:$0xf]  ;;  %v2006_v15 = vld [vmem:[#allocation4 + $0x50] sm:$0xf0] }
  0x99   :  { %743 = vmatpush.msra.mxu1 %v738_v19  ;;  %v1915_v19 = vld [vmem:[#allocation4 + $0x190] sm:$0xf] }
  0x9a   :  { %1234 = vmatpush.bf16.msrb.mxu0 %v1908_v17 }
  0x9b   :  { %744 = vmatpush.msra.mxu1 %v737_v20  ;;  %v2049_v20 = vld [vmem:[#allocation4 + $0x1a8] sm:$0xf0] }
  0x9d   :  { %745 = vmatpush.msra.mxu1 %v736_v22  ;;  %v1916_v22 = vor.u32 %v2049_v20, %v1915_v19  ;;  %v2003_v19 = vld [vmem:[#allocation4 + $0x3c] sm:$0xf]  ;;  %v2018_v20 = vld [vmem:[#allocation4 + $0xb4] sm:$0xf] }
  0x9f   :  { %746 = vmatpush.msra.mxu1 %v735_v23  ;;  %v1879_v23 = vld [vmem:[#allocation4 + $0x150] sm:$0xf]  ;;  %1260 = vmatpush.bf16.msra.mxu2 %v1916_v22  ;;  %v1741_v22 = vld [vmem:[#allocation4 + $0x54] sm:$0xf0] }
  0xa0   :  { %673 = vmatmul.bf16.vlgmr.msrb.gmra.mxu1 %v279_v21  ;;  %v1912_v21 = vor.u32 %v2045_v16, %v1909_v18 }
  0xa1   :  { %747 = vmatpush.msra.mxu1 %v734_v24  ;;  %v2041_v24 = vld [vmem:[#allocation4 + $0x168] sm:$0xf0] }
  0xa3   :  { %748 = vmatpush.msra.mxu1 %v733_v31 }
  0xa5   :  { %749 = vmatpush.msra.mxu1 %v732_v32  ;;  %v1851_v32 = vld [vmem:[#allocation4 + $0x118] sm:$0xf] }
  0xa7   :  { %750 = vmatpush.msra.mxu1 %v731_v34  ;;  %v2031_v34 = vld [vmem:[#allocation4 + $0x11c] sm:$0xf] }
  0xa9   :  { %751 = vmatpush.msra.mxu1 %v730_v35  ;;  %v1853_v35 = vld [vmem:[#allocation4 + $0x134] sm:$0xf0] }
  0xab   :  { %752 = vmatpush.msra.mxu1 %v729_v38 }
  0xad   :  { %753 = vmatpush.msra.mxu1 %v728_v39  ;;  %v1823_v39 = vld [vmem:[#allocation4 + $0xe0] sm:$0xf] }
  0xaf   :  { %v661_v25 = vpop.f32.mrf.mxu0  ;;  %754 = vmatpush.msra.mxu1 %v727_v41  ;;  %v1856_v41 = vor.u32 %v2031_v34, %v1853_v35  ;;  %v1713_v34 = vld [vmem:[#allocation4 + $0x1c] sm:$0xf0]  ;;  %v1719_v35 = vld [vmem:[#allocation4 + $0x8] sm:$0xf] }
  0xb1   :  { %755 = vmatpush.msra.mxu1 %v726_v43  ;;  %v2024_v43 = vld [vmem:[#allocation4 + $0xe4] sm:$0xf] }
  0xb2   :  { %v635_v26 = vpop.f32.mrf.mxu2 }
  0xb3   :  { %v648_v27 = vpop.f32.mrf.mxu3  ;;  %756 = vmatpush.msra.mxu1 %v725_v45  ;;  %v1917_v45 = vld [vmem:[#allocation4 + $0x1ac] sm:$0xf0] }
  0xb5   :  { %757 = vmatpush.msra.mxu1 %v724_v46  ;;  %v1825_v46 = vld [vmem:[#allocation4 + $0xfc] sm:$0xf0] }
  0xb7   :  { %v663_v28 = vpop.f32.mrf.mxu0  ;;  %758 = vmatpush.msra.mxu1 %v723_v47  ;;  %v1831_v47 = vld [vmem:[#allocation4 + $0xe8] sm:$0xf] }
  0xb8   :  { %v1887_v28 = vld [vmem:[#allocation4 + $0x158] sm:$0xf] }
  0xb9   :  { %1247 = vmatpush.bf16.msrb.mxu1 %v1912_v21  ;;  %v1805_v21 = vld [vmem:[#allocation4 + $0xcc] sm:$0xf0] }
  0xba   :  { %v637_v29 = vpop.f32.mrf.mxu2 }
  0xbb   :  { %v650_v30 = vpop.f32.mrf.mxu3  ;;  %v2042_v29 = vld [vmem:[#allocation4 + $0x170] sm:$0xf0] }
  0xbc   :  { %v1888_v31 = vor.u32 %v2042_v29, %v1887_v28  ;;  %v1808_v28 = vor.u32 %v2018_v20, %v1805_v21  ;;  %v1744_v29 = vor.u32 %v2003_v19, %v1741_v22  ;;  %v2030_v19 = vld [vmem:[#allocation4 + $0x110] sm:$0xf0]  ;;  %v1811_v21 = vld [vmem:[#allocation4 + $0xb8] sm:$0xf] }
  0xbd   :  { %v2022_v22 = vld [vmem:[#allocation4 + $0xd0] sm:$0xf0] }
  0xbe   :  { %1261 = vmatpush.bf16.msra.mxu2 %v1888_v31  ;;  %v1996_v31 = vld [vmem:[#allocation4 + $0x4] sm:$0xf] }
  0xcf   :  { %v713_v37 = vpop.f32.mrf.mxu0 }
  0xd2   :  { %v687_v33 = vpop.f32.mrf.mxu2 }
  0xd3   :  { %v700_v36 = vpop.f32.mrf.mxu3 }
  0xd7   :  { %v715_v44 = vpop.f32.mrf.mxu0 }
  0xd8   :  { %v2046_v44 = vld [vmem:[#allocation4 + $0x194] sm:$0xf] }
  0xd9   :  { %v1920_v49 = vor.u32 %v2046_v44, %v1917_v45  ;;  %v1716_v45 = vor.u32 %v1996_v31, %v1713_v34  ;;  %v2015_v31 = vld [vmem:[#allocation4 + $0x98] sm:$0xf0]  ;;  %v1785_v34 = vld [vmem:[#allocation4 + $0x9c] sm:$0xf0] }
  0xda   :  { %v689_v40 = vpop.f32.mrf.mxu2 }
  0xdb   :  { %v702_v42 = vpop.f32.mrf.mxu3  ;;  %v2027_v40 = vld [vmem:[#allocation4 + $0xf8] sm:$0xf0] }
  0xe3   :  { %v801_v0 = vpop.f32.mrf.mxu3 }
  0xe4   :  { %v802_v4 = vadd.f32 %v2063_v63, %v801_v0  ;;  %v1767_v0 = vld [vmem:[#allocation4 + $0x70] sm:$0xf] }
  0xe6   :  { %v804_v5 = vmax.f32 %v802_v4, 0.0 }
  0xe8   :  { %1706 = vmatmul.msk.f32.vlgmr.msrb.gmra.mxu3 %vm241_vm2, %v804_v5 }
  0xe9   :  { %1273 = vmatpush.bf16.msrb.mxu3 %v1920_v49 }
 0x115   :  { %v262_v50 = vpop.f32.mrf.mxu1 }
 0x116   :  { %v636_v51 = vadd.f32 %v635_v26, %v262_v50  ;;  %v1880_v26 = vor.u32 %v2041_v24, %v1879_v23  ;;  %v2039_v50 = vld [vmem:[#allocation4 + $0x15c] sm:$0xf]  ;;  %v1747_v23 = vld [vmem:[#allocation4 + $0x40] sm:$0xf] }
 0x117   :  { %v2007_v24 = vld [vmem:[#allocation4 + $0x58] sm:$0xf0] }
 0x118   :  { %v649_v52 = vadd.f32 %v648_v27, %v636_v51  ;;  %v1881_v27 = vld [vmem:[#allocation4 + $0x16c] sm:$0xf0]  ;;  %1235 = vmatpush.bf16.msrb.mxu0 %v1880_v26  ;;  %v1824_v51 = vor.u32 %v2027_v40, %v1823_v39  ;;  %v1711_v26 = vld [vmem:[#allocation4] sm:$0xf]  ;;  %v2047_v39 = vld [vmem:[#allocation4 + $0x19c] sm:$0xf] }
 0x11a   :  { %v662_v53 = vadd.f32 %v661_v25, %v649_v52  ;;  %v2038_v25 = vld [vmem:[#allocation4 + $0x154] sm:$0xf]  ;;  %v1795_v52 = vld [vmem:[#allocation4 + $0xa8] sm:$0xf] }
 0x11b   :  { %v1884_v30 = vor.u32 %v2038_v25, %v1881_v27  ;;  %v1740_v25 = vor.u32 %v2006_v15, %v1739_v14  ;;  %v1999_v27 = vld [vmem:[#allocation4 + $0x18] sm:$0xf0]  ;;  %v2026_v14 = vld [vmem:[#allocation4 + $0xf4] sm:$0xf]  ;;  %v1841_v15 = vld [vmem:[#allocation4 + $0x10c] sm:$0xf0] }
 0x11c   :  { %v1712_v40 = vor.u32 %v1999_v27, %v1711_v26  ;;  %v1819_v26 = vld [vmem:[#allocation4 + $0xc0] sm:$0xf]  ;;  %v2023_v27 = vld [vmem:[#allocation4 + $0xd8] sm:$0xf0] }
 0x11d   :  { %v674_v54 = vpop.f32.mrf.mxu1  ;;  %1248 = vmatpush.bf16.msrb.mxu1 %v1884_v30  ;;  %v1748_v30 = vor.u32 %v2007_v24, %v1747_v23  ;;  %v2019_v23 = vld [vmem:[#allocation4 + $0xbc] sm:$0xf]  ;;  %v1812_v24 = vor.u32 %v2022_v22, %v1811_v21 }
 0x11e   :  { %v675_v55 = vadd.f32 %v674_v54, %v662_v53  ;;  %v2020_v53 = vld [vmem:[#allocation4 + $0xc0] sm:$0xf0]  ;;  %v1889_v54 = vld [vmem:[#allocation4 + $0x174] sm:$0xf0] }
 0x11f   :  { %v1796_v63 = vor.u32 %v2020_v53, %v1795_v52  ;;  %v1895_v52 = vld [vmem:[#allocation4 + $0x160] sm:$0xf]  ;;  %v2043_v53 = vld [vmem:[#allocation4 + $0x178] sm:$0xf0] }
 0x120   :  { %v688_v56 = vadd.f32 %v687_v33, %v675_v55  ;;  %v2034_v33 = vld [vmem:[#allocation4 + $0x130] sm:$0xf0]  ;;  %v1828_v55 = vor.u32 %v2024_v43, %v1825_v46  ;;  %v2051_v43 = vld [vmem:[#allocation4 + $0x1b8] sm:$0xf0] }
 0x121   :  { %v1852_v38 = vor.u32 %v2034_v33, %v1851_v32  ;;  %1249 = vmatpush.bf16.msrb.mxu1 %v1856_v41  ;;  %v2011_v32 = vld [vmem:[#allocation4 + $0x7c] sm:$0xf]  ;;  %v1777_v33 = vld [vmem:[#allocation4 + $0x94] sm:$0xf0] }
 0x122   :  { %v701_v57 = vadd.f32 %v700_v36, %v688_v56  ;;  %v1859_v36 = vld [vmem:[#allocation4 + $0x120] sm:$0xf]  ;;  %v1832_v56 = vor.u32 %v2028_v48, %v1831_v47  ;;  %v1925_v41 = vld [vmem:[#allocation4 + $0x1b4] sm:$0xf0]  ;;  %v1780_v44 = vor.u32 %v2011_v32, %v1777_v33  ;;  %v2012_v32 = vld [vmem:[#allocation4 + $0x84] sm:$0xf] }
 0x123   :  { %1236 = vmatpush.bf16.msrb.mxu0 %v1852_v38  ;;  %v2050_v38 = vld [vmem:[#allocation4 + $0x1b0] sm:$0xf0] }
 0x124   :  { %v714_v59 = vadd.f32 %v713_v37, %v701_v57  ;;  %v2035_v37 = vld [vmem:[#allocation4 + $0x138] sm:$0xf0]  ;;  %v2017_v57 = vld [vmem:[#allocation4 + $0xac] sm:$0xf] }
 0x125   :  { %v676_v60 = vpop.f32.mrf.mxu1  ;;  %v1860_v42 = vor.u32 %v2035_v37, %v1859_v36  ;;  %1250 = vmatpush.bf16.msrb.mxu1 %v1828_v55  ;;  %v2000_v36 = vld [vmem:[#allocation4 + $0x20] sm:$0xf0]  ;;  %v1923_v37 = vld [vmem:[#allocation4 + $0x198] sm:$0xf]  ;;  %v1897_v55 = vld [vmem:[#allocation4 + $0x17c] sm:$0xf0] }
 0x126   :  { %v721_v61 = vadd.f32 %v2061_v58, %v714_v59  ;;  %v1797_v58 = vld [vmem:[#allocation4 + $0xc4] sm:$0xf0]  ;;  %v1803_v59 = vld [vmem:[#allocation4 + $0xb0] sm:$0xf]  ;;  %v1892_v60 = vor.u32 %v2039_v50, %v1889_v54  ;;  %v1720_v47 = vor.u32 %v2000_v36, %v1719_v35  ;;  %v1924_v48 = vor.u32 %v2050_v38, %v1923_v37  ;;  %v2040_v54 = vld [vmem:[#allocation4 + $0x164] sm:$0xf] }
 0x127   :  { %1262 = vmatpush.bf16.msra.mxu2 %v1860_v42  ;;  %1237 = vmatpush.bf16.msrb.mxu0 %v1824_v51  ;;  %v1800_v4 = vor.u32 %v2017_v57, %v1797_v58  ;;  %v1931_v42 = vld [vmem:[#allocation4 + $0x1a0] sm:$0xf]  ;;  %v1928_v50 = vor.u32 %v2047_v39, %v1925_v41  ;;  %v2044_v57 = vld [vmem:[#allocation4 + $0x180] sm:$0xf0]  ;;  %v1896_v58 = vor.u32 %v2043_v53, %v1895_v52  ;;  %v1791_v35 = vld [vmem:[#allocation4 + $0x88] sm:$0xf] }
 0x128   :  { %v722_v62 = vmax.f32 %v721_v61, 0.0  ;;  %v2021_v61 = vld [vmem:[#allocation4 + $0xc8] sm:$0xf0]  ;;  %1274 = vmatpush.bf16.msrb.mxu3 %v1892_v60  ;;  %v1932_v51 = vor.u32 %v2051_v43, %v1931_v42  ;;  %v2016_v36 = vld [vmem:[#allocation4 + $0xa0] sm:$0xf0]  ;;  %v1788_v37 = vor.u32 %v2012_v32, %v1785_v34 }
 0x129   :  { %v1804_v5 = vor.u32 %v2021_v61, %v1803_v59  ;;  %1251 = vmatpush.bf16.msrb.mxu1 %v1800_v4  ;;  %v1900_v59 = vor.u32 %v2040_v54, %v1897_v55  ;;  %v1749_v61 = vld [vmem:[#allocation4 + $0x5c] sm:$0xf0]  ;;  %v1792_v38 = vor.u32 %v2016_v36, %v1791_v35  ;;  %v1755_v39 = vld [vmem:[#allocation4 + $0x48] sm:$0xf]  ;;  %v2005_v41 = vld [vmem:[#allocation4 + $0x4c] sm:$0xf] }
 0x12a   :  { %759 = vmatmul.f32.vlgmr.msra.gmra.mxu1 %v722_v62  ;;  %v2032_v62 = vld [vmem:[#allocation4 + $0x124] sm:$0xf]  ;;  %v1757_v42 = vld [vmem:[#allocation4 + $0x64] sm:$0xf0]  ;;  %v1763_v43 = vld [vmem:[#allocation4 + $0x50] sm:$0xf] }
 0x12b   :  { %v1864_v3 = vor.u32 %v2032_v62, %v1861_v2  ;;  %1263 = vmatpush.bf16.msra.mxu2 %v1832_v56  ;;  %1238 = vmatpush.bf16.msrb.mxu0 %v1796_v63  ;;  %v1903_v56 = vld [vmem:[#allocation4 + $0x168] sm:$0xf]  ;;  %v2036_v63 = vld [vmem:[#allocation4 + $0x140] sm:$0xf0]  ;;  %v1735_v52 = vld [vmem:[#allocation4 + $0x18] sm:$0xf] }
 0x12c   :  { %v1904_v60 = vor.u32 %v2044_v57, %v1903_v56  ;;  %v1867_v62 = vld [vmem:[#allocation4 + $0x128] sm:$0xf]  ;;  %v2002_v53 = vld [vmem:[#allocation4 + $0x30] sm:$0xf0] }
 0x12d   :  { %1275 = vmatpush.bf16.msrb.mxu3 %v1864_v3  ;;  %v1868_v3 = vor.u32 %v2036_v63, %v1867_v62  ;;  %v1736_v56 = vor.u32 %v2002_v53, %v1735_v52 }
 0x12f   :  { %1264 = vmatpush.bf16.msra.mxu2 %v1804_v5  ;;  %v1875_v5 = vld [vmem:[#allocation4 + $0x130] sm:$0xf] }
 0x16b   :  { %v828_v57 = vpop.f32.mrf.mxu3 }
 0x1a7   :  { %v760_v7 = vpop.f32.mrf.mxu1 }
 0x1a8   :  { %v2368_v8 = vadd.f32 %v2062_v6, %v760_v7  ;;  %v2010_v6 = vld [vmem:[#allocation4 + $0x74] sm:$0xf]  ;;  %v2025_v7 = vld [vmem:[#allocation4 + $0xec] sm:$0xf] }
 0x1aa   :  { %v763_v9 = vmul.f32 0.5, %v2368_v8  ;;  %1466 = vst.msk [vmem:[%s2443_s17] sm:$0xff] %vm1465_vm4, %v2368_v8 }
 0x1ac   :  { %v764_v10 = vmul.f32 1.442695, %v763_v9  ;;  %v1833_v9 = vld [vmem:[#allocation4 + $0x104] sm:$0xf0] }
 0x1ad   :  { %v1836_v16 = vor.u32 %v2025_v7, %v1833_v9  ;;  %v1997_v9 = vld [vmem:[#allocation4 + $0xc] sm:$0xf] }
 0x1ae   :  { %2065 = vpow2.f32 %v764_v10  ;;  %v1769_v10 = vld [vmem:[#allocation4 + $0x8c] sm:$0xf0] }
 0x1af   :  { %v1772_v17 = vor.u32 %v2010_v6, %v1769_v10  ;;  %1276 = vmatpush.bf16.msrb.mxu3 %v1836_v16  ;;  %v2037_v6 = vld [vmem:[#allocation4 + $0x148] sm:$0xf0]  ;;  %v1721_v10 = vld [vmem:[#allocation4 + $0x24] sm:$0xf0] }
 0x1b0   :  { %v1876_v7 = vor.u32 %v2037_v6, %v1875_v5 }
 0x1b1   :  { %1252 = vmatpush.bf16.msrb.mxu1 %v1772_v17  ;;  %v1844_v17 = vor.u32 %v2026_v14, %v1841_v15 }
 0x1b3   :  { %1277 = vmatpush.bf16.msrb.mxu3 %v1808_v28 }
 0x1b4   :  { %v2066_v12 = vpop.eup %2065 }
 0x1b5   :  { %v769_v13 = vmul.f32 %v2066_v12, %v767_v11  ;;  %v1775_v11 = vld [vmem:[#allocation4 + $0x78] sm:$0xf]  ;;  %v2014_v12 = vld [vmem:[#allocation4 + $0x90] sm:$0xf0]  ;;  %1253 = vmatpush.bf16.msrb.mxu1 %v1744_v29  ;;  %v1820_v29 = vor.u32 %v2023_v27, %v1819_v26 }
 0x1b6   :  { %v1776_v18 = vor.u32 %v2014_v12, %v1775_v11  ;;  %v1839_v11 = vld [vmem:[#allocation4 + $0xf0] sm:$0xf]  ;;  %v1724_v12 = vor.u32 %v1997_v9, %v1721_v10 }
 0x1b7   :  { %771 = vrot.lane.b32.xlu0 %v769_v13, %s2154_s12  ;;  %v1768_v13 = vor.u32 %v2013_v1, %v1767_v0  ;;  %1278 = vmatpush.bf16.msrb.mxu3 %v1780_v44  ;;  %v2033_v0 = vld [vmem:[#allocation4 + $0x12c] sm:$0xf]  ;;  %v1869_v1 = vld [vmem:[#allocation4 + $0x144] sm:$0xf0] }
 0x1b8   :  { %1265 = vmatpush.bf16.msra.mxu2 %v1776_v18  ;;  %v1872_v4 = vor.u32 %v2033_v0, %v1869_v1  ;;  %v1847_v18 = vld [vmem:[#allocation4 + $0xf8] sm:$0xf]  ;;  %v2009_v44 = vld [vmem:[#allocation4 + $0x68] sm:$0xf0] }
 0x1b9   :  { %1239 = vmatpush.bf16.msrb.mxu0 %v1768_v13  ;;  %1254 = vmatpush.bf16.msrb.mxu1 %v1716_v45  ;;  %v2029_v13 = vld [vmem:[#allocation4 + $0x108] sm:$0xf0]  ;;  %v1848_v20 = vor.u32 %v2030_v19, %v1847_v18 }
 0x1ba   :  { %v1840_v16 = vor.u32 %v2029_v13, %v1839_v11 }
 0x1bc   :  { %1266 = vmatpush.bf16.msra.mxu2 %v1748_v30  ;;  %v1783_v30 = vld [vmem:[#allocation4 + $0x80] sm:$0xf] }
 0x1bd   :  { %1240 = vmatpush.bf16.msrb.mxu0 %v1740_v25  ;;  %1299 = vmatpush.bf16.msra.mxu1 %v1928_v50  ;;  %v1813_v25 = vld [vmem:[#allocation4 + $0xd4] sm:$0xf0]  ;;  %v1784_v33 = vor.u32 %v2015_v31, %v1783_v30  ;;  %v1998_v50 = vld [vmem:[#allocation4 + $0x14] sm:$0xf] }
 0x1be   :  { %v1816_v28 = vor.u32 %v2019_v23, %v1813_v25 }
 0x1c0   :  { %1267 = vmatpush.bf16.msra.mxu2 %v1720_v47  ;;  %v1764_v47 = vor.u32 %v2009_v44, %v1763_v43 }
 0x1c1   :  { %1241 = vmatpush.bf16.msrb.mxu0 %v1712_v40  ;;  %1300 = vmatpush.bf16.msra.mxu1 %v1900_v59  ;;  %v2008_v40 = vld [vmem:[#allocation4 + $0x60] sm:$0xf0] }
 0x1c2   :  { %v1756_v45 = vor.u32 %v2008_v40, %v1755_v39 }
 0x1c4   :  { %1312 = vmatpush.bf16.msrb.mxu2 %v1932_v51  ;;  %v1729_v51 = vld [vmem:[#allocation4 + $0x2c] sm:$0xf0] }
 0x1c5   :  { %1286 = vmatpush.bf16.msra.mxu0 %v1924_v48  ;;  %1301 = vmatpush.bf16.msra.mxu1 %v1872_v4  ;;  %v1727_v48 = vld [vmem:[#allocation4 + $0x10] sm:$0xf]  ;;  %v1732_v55 = vor.u32 %v1998_v50, %v1729_v51 }
 0x1c8   :  { %1313 = vmatpush.bf16.msrb.mxu2 %v1904_v60 }
 0x1c9   :  { %1287 = vmatpush.bf16.msra.mxu0 %v1896_v58  ;;  %1302 = vmatpush.bf16.msra.mxu1 %v1844_v17  ;;  %v2064_v58 = vld [vmem:[%s2439_s13] ss:$0 sm:$0xff] }
 0x1cc   :  { %1314 = vmatpush.bf16.msrb.mxu2 %v1876_v7 }
 0x1cd   :  { %1288 = vmatpush.bf16.msra.mxu0 %v1868_v3  ;;  %1303 = vmatpush.bf16.msra.mxu1 %v1816_v28 }
 0x1d0   :  { %1315 = vmatpush.bf16.msrb.mxu2 %v1848_v20 }
 0x1d1   :  { %1289 = vmatpush.bf16.msra.mxu0 %v1840_v16  ;;  %1304 = vmatpush.bf16.msra.mxu1 %v1788_v37 }
 0x1d4   :  { %1316 = vmatpush.bf16.msrb.mxu2 %v1820_v29 }
 0x1d5   :  { %1290 = vmatpush.bf16.msra.mxu0 %v1812_v24 }
 0x1d8   :  { %1317 = vmatpush.bf16.msrb.mxu2 %v1792_v38 }
 0x1d9   :  { %1291 = vmatpush.bf16.msra.mxu0 %v1784_v33 }
 0x1dc   :  { %1318 = vmatpush.bf16.msrb.mxu2 %v1764_v47 }
 0x1dd   :  { %1292 = vmatpush.bf16.msra.mxu0 %v1756_v45 }
 0x1e0   :  { %1319 = vmatpush.bf16.msrb.mxu2 %v1736_v56 }
 0x229   :  { %v772_v46 = vpop.permute.xlu0 %771 }
 0x22a   :  { %v774_v49 = vadd.f32 %v772_v46, %v2368_v8  ;;  %v2004_v8 = vld [vmem:[#allocation4 + $0x44] sm:$0xf]  ;;  %v1760_v46 = vor.u32 %v2005_v41, %v1757_v42 }
 0x22b   :  { %v1752_v2 = vor.u32 %v2004_v8, %v1749_v61 }
 0x22c   :  { %1708 = vmatmul.msk.f32.vlgmr.msra.gmra.mxu3 %vm831_vm5, %v774_v49  ;;  %v2001_v49 = vld [vmem:[#allocation4 + $0x28] sm:$0xf0]  ;;  %1305 = vmatpush.bf16.msra.mxu1 %v1760_v46 }
 0x22d   :  { %1279 = vmatpush.bf16.msrb.mxu3 %v1752_v2  ;;  %v1728_v54 = vor.u32 %v2001_v49, %v1727_v48  ;;  %v2382_v2 = vld [vmem:[%s2441_s15] sm:$0xff] }
 0x22e   :  { %v932_v63 = vperm.slane %v2382_v2, 0  ;;  %v933_v0 = vperm.slane %v2382_v2, 1  ;;  %v934_v9 = vperm.slane %v2382_v2, 2  ;;  %v935_v10 = vperm.slane %v2382_v2, 3 }
 0x22f   :  { %1293 = vmatpush.bf16.msra.mxu0 %v1728_v54  ;;  %v936_v23 = vperm.slane %v2382_v2, 4  ;;  %v937_v24 = vperm.slane %v2382_v2, 5  ;;  %v938_v39 = vperm.slane %v2382_v2, 6 }
 0x230   :  { %1306 = vmatpush.bf16.msra.mxu1 %v1732_v55 }
 0x231   :  { %1280 = vmatpush.bf16.msrb.mxu3 %v1724_v12 }
 0x2af   :  { %v856_v59 = vpop.f32.mrf.mxu3 }
 0x2b0   :  { %v857_v60 = vadd.f32 %v856_v59, %v828_v57 }
 0x2b2   :  { %v863_v8 = vadd.f32 %v2064_v58, %v857_v60 }
 0x2b4   :  { %v864_v61 = vmax.f32 %v863_v8, 0.0 }
 0x2b6   :  { %v865_v62 = vpack.c.bf16 %v864_v61, %v864_v61 }
 0x2b8   :  { %1242 = vmatmul.bf16.vlgmr.msrb.gmra.mxu0 %v865_v62  ;;  %1255 = vmatmul.bf16.vlgmr.msrb.gmra.mxu1 %v865_v62 }
 0x2b9   :  { %1268 = vmatmul.bf16.vlgmr.msra.gmra.mxu2 %v865_v62  ;;  %1281 = vmatmul.bf16.vlgmr.msrb.gmra.mxu3 %v865_v62 }
 0x2c8   :  { %1294 = vmatmul.bf16.vlgmr.msra.gmra.mxu0 %v865_v62  ;;  %1307 = vmatmul.bf16.vlgmr.msra.gmra.mxu1 %v865_v62 }
 0x2c9   :  { %1320 = vmatmul.bf16.vlgmr.msrb.gmra.mxu2 %v865_v62 }
 0x335   :  { %v1243_v1 = vpop.f32.mrf.mxu0  ;;  %v1256_v3 = vpop.f32.mrf.mxu1 }
 0x336   :  { %v1244_v4 = vadd.f32 %v1243_v1, %v932_v63  ;;  %v1257_v5 = vadd.f32 %v1256_v3, %v933_v0 }
 0x338   :  { %v1933_v6 = vmul.f32 -1.442695, %v1244_v4  ;;  %v1934_v7 = vmul.f32 -1.442695, %v1257_v5 }
 0x33a   :  { %2067 = vpow2.f32 %v1933_v6 }
 0x33b   :  { %2069 = vpow2.f32 %v1934_v7 }
 0x33c   :  { %v1269_v11 = vpop.f32.mrf.mxu2  ;;  %v1282_v12 = vpop.f32.mrf.mxu3 }
 0x33d   :  { %v1270_v13 = vadd.f32 %v1269_v11, %v934_v9  ;;  %v1283_v14 = vadd.f32 %v1282_v12, %v935_v10  ;;  %v1245_v15 = vpop.f32.mrf.mxu0  ;;  %v1258_v16 = vpop.f32.mrf.mxu1 }
 0x33f   :  { %v1935_v17 = vmul.f32 -1.442695, %v1270_v13  ;;  %v1936_v18 = vmul.f32 -1.442695, %v1283_v14 }
 0x340   :  { %v2068_v19 = vpop.eup %2067 }
 0x341   :  { %v2070_v20 = vpop.eup %2069  ;;  %v1346_v21 = vadd.f32 1.0, %v2068_v19  ;;  %2071 = vpow2.f32 %v1935_v17 }
 0x342   :  { %v1347_v22 = vadd.f32 1.0, %v2070_v20  ;;  %2073 = vpow2.f32 %v1936_v18 }
 0x343   :  { %2075 = vrcp.f32 %v1346_v21  ;;  %v1362_v43 = vand.u32 2147483647, %v1346_v21  ;;  %v1364_v45 = vand.u32 2147483648, %v1346_v21  ;;  %vm1358_vm8 = vweird.f32 %v1346_v21 }
 0x344   :  { %2077 = vrcp.f32 %v1347_v22  ;;  %v1271_v25 = vpop.f32.mrf.mxu2  ;;  %v1284_v26 = vpop.f32.mrf.mxu3  ;;  %v1377_v47 = vand.u32 2147483647, %v1347_v22  ;;  %v1379_v48 = vand.u32 2147483648, %v1347_v22  ;;  %vm1373_vm9 = vweird.f32 %v1347_v22 }
 0x345   :  { %v1295_v27 = vpop.f32.mrf.mxu0  ;;  %v1308_v28 = vpop.f32.mrf.mxu1  ;;  %vm1363_vm11 = vcmp.eq.f32.partialorder %v1362_v43, 8.507059e+37  ;;  %v1365_v57 = vor.u32 1.1754944e-38, %v1364_v45 }
 0x346   :  { %v1296_v29 = vadd.f32 %v1295_v27, %v936_v23  ;;  %v1309_v31 = vadd.f32 %v1308_v28, %v937_v24  ;;  %vm1378_vm13 = vcmp.eq.f32.partialorder %v1377_v47, 8.507059e+37  ;;  %v1380_v61 = vor.u32 1.1754944e-38, %v1379_v48 }
 0x347   :  { %v2072_v30 = vpop.eup %2071 }
 0x348   :  { %v2074_v32 = vpop.eup %2073  ;;  %v2390_v33 = vadd.f32 1.0, %v2072_v30  ;;  %v1937_v38 = vmul.f32 -1.442695, %v1296_v29  ;;  %v1938_v41 = vmul.f32 -1.442695, %v1309_v31 }
 0x349   :  { %v2076_v34 = vpop.eup %2075  ;;  %v2392_v35 = vadd.f32 1.0, %v2074_v32 }
 0x34a   :  { %v2078_v36 = vpop.eup %2077  ;;  %v1354_v37 = vmul.f32 %v2076_v34, %v1346_v21  ;;  %2079 = vrcp.f32 %v2390_v33  ;;  %vm1359_vm6 = vweird.f32 %v2076_v34  ;;  %v1392_v4 = vand.u32 2147483647, %v2390_v33 }
 0x34b   :  { %v1369_v40 = vmul.f32 %v2078_v36, %v1347_v22  ;;  %2081 = vrcp.f32 %v2392_v35  ;;  %vm1374_vm7 = vweird.f32 %v2078_v36  ;;  %vm1360_vm10 = vmor %vm1358_vm8, %vm1359_vm6  ;;  %v1394_v5 = vand.u32 2147483648, %v2390_v33 }
 0x34c   :  { %v1355_v42 = vsub.f32 1.0, %v1354_v37  ;;  %v1321_v44 = vpop.f32.mrf.mxu2  ;;  %2083 = vpow2.f32 %v1937_v38  ;;  %vm1375_vm12 = vmor %vm1373_vm9, %vm1374_vm7  ;;  %vm1388_vm15 = vweird.f32 %v2390_v33  ;;  %v1407_v12 = vand.u32 2147483647, %v2392_v35 }
 0x34d   :  { %v1370_v46 = vsub.f32 1.0, %v1369_v40  ;;  %v1297_v49 = vpop.f32.mrf.mxu0  ;;  %v1310_v50 = vpop.f32.mrf.mxu1  ;;  %v1322_v52 = vadd.f32 %v1321_v44, %v938_v39  ;;  %2085 = vpow2.f32 %v1938_v41  ;;  %v1409_v13 = vand.u32 2147483648, %v2392_v35 }
 0x34e   :  { %v1356_v51 = vmul.f32 %v2076_v34, %v1355_v42  ;;  %v1395_v18 = vor.u32 1.1754944e-38, %v1394_v5  ;;  %vm1393_vm2 = vcmp.eq.f32.partialorder %v1392_v4, 8.507059e+37  ;;  %vm1403_vm3 = vweird.f32 %v2392_v35 }
 0x34f   :  { %v1371_v53 = vmul.f32 %v2078_v36, %v1370_v46  ;;  %v1939_v56 = vmul.f32 -1.442695, %v1322_v52  ;;  %v1410_v22 = vor.u32 1.1754944e-38, %v1409_v13  ;;  %vm1408_vm5 = vcmp.eq.f32.partialorder %v1407_v12, 8.507059e+37 }
 0x350   :  { %v2080_v54 = vpop.eup %2079  ;;  %v1357_v55 = vadd.f32 %v2076_v34, %v1356_v51 }
 0x351   :  { %v1372_v58 = vadd.f32 %v2078_v36, %v1371_v53  ;;  %v1384_v59 = vmul.f32 %v2080_v54, %v2390_v33  ;;  %v2082_v60 = vpop.eup %2081  ;;  %2087 = vpow2.f32 %v1939_v56  ;;  %vm1389_vm14 = vweird.f32 %v2080_v54 }
 0x352   :  { %v1361_v8 = vsel %vm1360_vm10, %v2076_v34, %v1357_v55  ;;  %v1399_v0 = vmul.f32 %v2082_v60, %v2392_v35  ;;  %v2084_v1 = vpop.eup %2083  ;;  %vm1404_vm0 = vweird.f32 %v2082_v60  ;;  %vm1390_vm1 = vmor %vm1388_vm15, %vm1389_vm14 }
 0x353   :  { %v1366_v62 = vsel %vm1363_vm11, %v1365_v57, %v1361_v8  ;;  %v1376_v2 = vsel %vm1375_vm12, %v2078_v36, %v1372_v58  ;;  %v1385_v63 = vsub.f32 1.0, %v1384_v59  ;;  %v2086_v7 = vpop.eup %2085  ;;  %v1350_v11 = vadd.f32 1.0, %v2084_v1  ;;  %vm1405_vm4 = vmor %vm1403_vm3, %vm1404_vm0 }
 0x354   :  { %1458 = vst [vmem:[%s2442_s16] sm:$0xff] %v1366_v62  ;;  %v1381_v3 = vsel %vm1378_vm13, %v1380_v61, %v1376_v2  ;;  %v1323_v6 = vpop.f32.mrf.mxu2  ;;  %v1400_v10 = vsub.f32 1.0, %v1399_v0  ;;  %v1351_v14 = vadd.f32 1.0, %v2086_v7 }
 0x355   :  { %1459 = vst [vmem:[%s2442_s16 + $0x8] sm:$0xff] %v1381_v3  ;;  %v1386_v9 = vmul.f32 %v2080_v54, %v1385_v63  ;;  %2089 = vrcp.f32 %v1350_v11  ;;  %v1422_v31 = vand.u32 2147483647, %v1350_v11  ;;  %v1424_v32 = vand.u32 2147483648, %v1350_v11 }
 0x356   :  { %v1401_v16 = vmul.f32 %v2082_v60, %v1400_v10  ;;  %2091 = vrcp.f32 %v1351_v14  ;;  %v1437_v34 = vand.u32 2147483647, %v1351_v14  ;;  %v1439_v37 = vand.u32 2147483648, %v1351_v14 }
 0x357   :  { %v1387_v15 = vadd.f32 %v2080_v54, %v1386_v9  ;;  %v2088_v17 = vpop.eup %2087  ;;  %vm1418_vm8 = vweird.f32 %v1350_v11  ;;  %vm1423_vm9 = vcmp.eq.f32.partialorder %v1422_v31, 8.507059e+37  ;;  %vm1433_vm10 = vweird.f32 %v1351_v14 }
 0x358   :  { %v1402_v20 = vadd.f32 %v2082_v60, %v1401_v16  ;;  %v1352_v23 = vadd.f32 1.0, %v2088_v17  ;;  %v1425_v41 = vor.u32 1.1754944e-38, %v1424_v32  ;;  %vm1438_vm12 = vcmp.eq.f32.partialorder %v1437_v34, 8.507059e+37 }
 0x359   :  { %v1391_v19 = vsel %vm1390_vm1, %v2080_v54, %v1387_v15  ;;  %v1440_v45 = vor.u32 1.1754944e-38, %v1439_v37 }
 0x35a   :  { %v1396_v21 = vsel %vm1393_vm2, %v1395_v18, %v1391_v19  ;;  %v1406_v24 = vsel %vm1405_vm4, %v2082_v60, %v1402_v20  ;;  %2093 = vrcp.f32 %v1352_v23  ;;  %v1452_v46 = vand.u32 2147483647, %v1352_v23 }
 0x35b   :  { %1460 = vst [vmem:[%s2442_s16 + $0x10] sm:$0xff] %v1396_v21  ;;  %v1411_v25 = vsel %vm1408_vm5, %v1410_v22, %v1406_v24  ;;  %v2090_v26 = vpop.eup %2089  ;;  %v1454_v47 = vand.u32 2147483648, %v1352_v23  ;;  %vm1448_vm15 = vweird.f32 %v1352_v23 }
 0x35c   :  { %1461 = vst [vmem:[%s2442_s16 + $0x18] sm:$0xff] %v1411_v25  ;;  %v2092_v27 = vpop.eup %2091  ;;  %v1414_v28 = vmul.f32 %v2090_v26, %v1350_v11  ;;  %vm1419_vm6 = vweird.f32 %v2090_v26  ;;  %vm1453_vm1 = vcmp.eq.f32.partialorder %v1452_v46, 8.507059e+37 }
 0x35d   :  { %v1429_v29 = vmul.f32 %v2092_v27, %v1351_v14  ;;  %vm1434_vm7 = vweird.f32 %v2092_v27  ;;  %vm1420_vm11 = vmor %vm1418_vm8, %vm1419_vm6  ;;  %v1455_v53 = vor.u32 1.1754944e-38, %v1454_v47 }
 0x35e   :  { %v1415_v30 = vsub.f32 1.0, %v1414_v28  ;;  %vm1435_vm13 = vmor %vm1433_vm10, %vm1434_vm7 }
 0x35f   :  { %v1430_v33 = vsub.f32 1.0, %v1429_v29 }
 0x360   :  { %v2094_v35 = vpop.eup %2093  ;;  %v1416_v36 = vmul.f32 %v2090_v26, %v1415_v30 }
 0x361   :  { %v1431_v38 = vmul.f32 %v2092_v27, %v1430_v33  ;;  %v1444_v39 = vmul.f32 %v2094_v35, %v1352_v23  ;;  %vm1449_vm14 = vweird.f32 %v2094_v35 }
 0x362   :  { %v1417_v40 = vadd.f32 %v2090_v26, %v1416_v36  ;;  %vm1450_vm0 = vmor %vm1448_vm15, %vm1449_vm14 }
 0x363   :  { %v1432_v42 = vadd.f32 %v2092_v27, %v1431_v38  ;;  %v1445_v43 = vsub.f32 1.0, %v1444_v39 }
 0x364   :  { %v1421_v44 = vsel %vm1420_vm11, %v2090_v26, %v1417_v40 }
 0x365   :  { %v1426_v48 = vsel %vm1423_vm9, %v1425_v41, %v1421_v44  ;;  %v1436_v49 = vsel %vm1435_vm13, %v2092_v27, %v1432_v42  ;;  %v1446_v50 = vmul.f32 %v2094_v35, %v1445_v43 }
 0x366   :  { %1462 = vst [vmem:[%s2442_s16 + $0x20] sm:$0xff] %v1426_v48  ;;  %v1441_v51 = vsel %vm1438_vm12, %v1440_v45, %v1436_v49 }
 0x367   :  { %1463 = vst [vmem:[%s2442_s16 + $0x28] sm:$0xff] %v1441_v51  ;;  %v1447_v52 = vadd.f32 %v2094_v35, %v1446_v50 }
 0x369   :  { %v1451_v54 = vsel %vm1450_vm0, %v2094_v35, %v1447_v52 }
 0x36a   :  { %v1456_v55 = vsel %vm1453_vm1, %v1455_v53, %v1451_v54 }
 0x36b   :  { %1464 = vst [vmem:[%s2442_s16 + $0x30] sm:$0xff] %v1456_v55 }
 0x36c   :  { %1475 = vsyncpa [#allocation3], 1 }
 0x36d   :  { %1476 = vsyncpa [#allocation5], 1 }

</bundles_post_ra>
